<compile_context>
chip_gen: v6e
topology: v6e:2x2x1
jax: 0.10.0
libtpu: 0.0.40
codegen_flags: <defaults>
</compile_context>

<pallas_src>
import numpy as np
import jax
import jax.numpy as jnp
from jax.experimental import pallas as pl
from jax.experimental.pallas import tpu as pltpu

POOL_OUT = 7          # backbone adaptive-pool output size
TILE_S, TILE_L = 8, 128   # TPU vreg tile (sublanes, lanes)


def adaptive_pool_matrix(out_size, in_size):
    """Row matrix implementing torch.nn.AdaptiveAvgPool semantics along one axis."""
    m = np.zeros((out_size, in_size), dtype=np.float32)
    for i in range(out_size):
        start = (i * in_size) // out_size
        end = -((-(i + 1) * in_size) // out_size)  # ceil((i+1)*in/out)
        m[i, start:end] = 1.0 / (end - start)
    return m


def _tpu_vmem_capacity():
    try:
        return int(pltpu.get_tpu_info().vmem_capacity_bytes)
    except Exception:
        return 64 << 20   # conservative (v7x-sized) fallback


def _num_tensorcores():
    try:
        d = jax.devices()[0]
        for attr in ("num_cores", "core_count"):
            v = getattr(d, attr, None)
            if isinstance(v, int) and v > 0:
                return v
    except Exception:
        pass
    return 1


def _choose_plane_block(planes, h, w, in_itemsize, budget_bytes, num_cores):
    """Planes per grid step, sized from the FULL per-step VMEM footprint."""
    per_plane = 2 * (                               # x2: y block AND y_hat block
        2 * h * w * in_itemsize                     #   double-buffered input DMA block
        + (h * w * 4 if in_itemsize < 4 else 0)     #   f32 cast copy
        + h * TILE_L * 4                            #   (h, 128) matmul intermediate
        + TILE_S * h * 4                            #   broadcast MH operand
        + 2 * TILE_S * TILE_L * 4)                  #   double-buffered output tile
    fixed = 2 * 2 * (w * TILE_L * 4 + TILE_S * h * 4)   # resident MWT / MH (x2 bufs)
    pb = int(max(1, (budget_bytes - fixed) // per_plane))
    pb = min(pb, planes)
    if num_cores >= 2 and planes >= 2:
        # >=2 grid steps so both TensorCores get work, and prefer an EVEN grid.
        pb = min(pb, -(-planes // 2))
        for cand in range(pb, 0, -1):
            if (-(-planes // cand)) % 2 == 0:
                pb = cand
                break
    return pb


# ----------------------------- Pallas kernels ------------------------------ #

def _pool_planes_kernel(y_ref, yh_ref, mh_ref, mwt_ref, oy_ref, oh_ref):
    # y_ref / yh_ref : (pb, H, W) blocks (full H, W) in the caller's image dtype.
    # mh_ref         : (8, H)   folded row-pool matrix, row 7 is zero   (resident)
    # mwt_ref        : (W, 128) folded col-pool matrix^T, lanes 7.. zero (resident)
    # oy_ref / oh_ref: (pb, 8, 128) one dense, already-zero-padded tile per plane.
    pb, h, w = y_ref.shape
    # hoisted once per invocation (broadcasts are not CSE'd)
    mh_b = jnp.broadcast_to(mh_ref[...], (pb, TILE_S, h))

    def pool_one(x_ref, o_ref):
        x = x_ref[...].astype(jnp.float32).reshape(pb * h, w)
        # W contraction: one flat MXU matmul for all planes in the block.
        t = jnp.dot(x, mwt_ref[...], preferred_element_type=jnp.float32)   # (pb*h, 128)
        t3 = t.reshape(pb, h, TILE_L)
        # H contraction: one batched matmul; result rows/lanes >= 7 are exact zeros,
        # so the store below is a fully dense (8,128)-tile store per plane.
        o_ref[...] = jnp.einsum("poh,phk->pok", mh_b, t3,
                                preferred_element_type=jnp.float32)        # (pb, 8, 128)

    pool_one(y_ref, oy_ref)
    pool_one(yh_ref, oh_ref)


def _embed_loss_kernel(fy_ref, fh_ref, w_ref, b_ref, o_ref):
    # fy_ref / fh_ref: (N, FPAD) pooled features for y / y_hat, FPAD = C*8*128
    # w_ref          : (FPAD, 512) tile-layout weight (zero rows at padding positions)
    # b_ref          : (1, 512);  o_ref: (1, 1)
    n = fy_ref.shape[0]
    e_y = jnp.dot(fy_ref[...], w_ref[...], preferred_element_type=jnp.float32) + b_ref[...]
    e_h = jnp.dot(fh_ref[...], w_ref[...], preferred_element_type=jnp.float32) + b_ref[...]
    dot = jnp.sum(e_y * e_h, axis=-1, keepdims=True)       # (N, 1)
    sy = jnp.sum(e_y * e_y, axis=-1, keepdims=True)
    sh = jnp.sum(e_h * e_h, axis=-1, keepdims=True)
    # epsilon guards rsqrt; reference divides unguarded (NaN only for zero embeddings)
    sim = jnp.abs(dot) * jax.lax.rsqrt(sy * sh + 1e-12)     # |cosine|
    o_ref[...] = jnp.sum(1.0 - sim, axis=0, keepdims=True) / float(n)


# ------------------------------- Module ------------------------------------ #

class IDLossT:
    EMB = 512

    def __init__(self, key, channels=3):
        self.c = channels
        self.feat_in = channels * POOL_OUT * POOL_OUT          # e.g. 147
        self.feat_pad = channels * TILE_S * TILE_L              # tile layout, e.g. 3072
        kw, kb = jax.random.split(key)
        self.w = jax.random.normal(kw, (self.feat_in, self.EMB), jnp.float32) / np.sqrt(self.feat_in)
        self.b = 0.01 * jax.random.normal(kb, (1, self.EMB), jnp.float32)
        # Expand w rows into the (c, 8, 128) tile layout emitted by the pooling kernel;
        # padding rows are zero so the padded feature lanes contribute nothing.
        w4 = np.zeros((channels, TILE_S, TILE_L, self.EMB), np.float32)
        w4[:, :POOL_OUT, :POOL_OUT, :] = np.asarray(self.w).reshape(
            channels, POOL_OUT, POOL_OUT, self.EMB)
        self.w_exp = jnp.asarray(w4.reshape(self.feat_pad, self.EMB))
        self.p7 = adaptive_pool_matrix(POOL_OUT, 112)   # synthetic backbone pool
        self.p112 = adaptive_pool_matrix(112, 188)      # face_pool after crop
        self._mat_cache = {}
        self._vmem_cap = _tpu_vmem_capacity()
        self._num_cores = _num_tensorcores()

    def _fold_matrices(self, h, w):
        """Fold pool-to-256 -> crop[35:223, 32:220] -> pool-112 -> pool-7 into one
        separable, tile-padded (8, h) / (w, 128) matrix pair."""
        key = (h, w)
        if key not in self._mat_cache:
            ph = adaptive_pool_matrix(256, h) if h != 256 else np.eye(256, dtype=np.float32)
            pw = adaptive_pool_matrix(256, w) if w != 256 else np.eye(256, dtype=np.float32)
            mh = self.p7 @ self.p112 @ ph[35:223, :]      # (7, h)
            mw = self.p7 @ self.p112 @ pw[32:220, :]      # (7, w)
            mh_pad = np.zeros((TILE_S, h), np.float32)
            mh_pad[:POOL_OUT] = mh
            mwt_pad = np.zeros((w, TILE_L), np.float32)
            mwt_pad[:, :POOL_OUT] = mw.T
            self._mat_cache[key] = (jnp.asarray(mh_pad), jnp.asarray(mwt_pad))
        return self._mat_cache[key]

    def __call__(self, y_hat, y):
        # Matches IDLoss.forward(y_hat, y) -> (loss, sim_improvement/count)
        if y.ndim == 5:
            y = y[0]
        if y_hat.ndim == 5:
            y_hat = y_hat[0]
        n, c, h, w = y.shape
        mh_pad, mwt_pad = self._fold_matrices(h, w)

        planes = n * c
        y3 = y.reshape(planes, h, w)        # contiguous reshapes: no data movement
        yh3 = y_hat.reshape(planes, h, w)

        budget = min(self._vmem_cap // 3, 40 << 20)
        vmem_limit = min(int(self._vmem_cap * 0.75), 100 << 20)
        itemsize = jnp.dtype(y.dtype).itemsize
        pb = _choose_plane_block(planes, h, w, itemsize, budget, self._num_cores)
        grid = (pl.cdiv(planes, pb),)       # pb need not divide planes; tail is masked

        pooled_y, pooled_h = pl.pallas_call(
            _pool_planes_kernel,
            out_shape=(jax.ShapeDtypeStruct((planes, TILE_S, TILE_L), jnp.float32),
                       jax.ShapeDtypeStruct((planes, TILE_S, TILE_L), jnp.float32)),
            grid=grid,
            in_specs=[
                pl.BlockSpec((pb, h, w), lambda i: (i, 0, 0)),
                pl.BlockSpec((pb, h, w), lambda i: (i, 0, 0)),
                # pool matrices: constant index map -> resident across the grid
                pl.BlockSpec((TILE_S, h), lambda i: (0, 0)),
                pl.BlockSpec((w, TILE_L), lambda i: (0, 0)),
            ],
            out_specs=(pl.BlockSpec((pb, TILE_S, TILE_L), lambda i: (i, 0, 0)),
                       pl.BlockSpec((pb, TILE_S, TILE_L), lambda i: (i, 0, 0))),
            compiler_params=pltpu.CompilerParams(
                dimension_semantics=("parallel",),
                vmem_limit_bytes=int(vmem_limit)),
        )(y3, yh3, mh_pad, mwt_pad)

        # (planes, 8, 128) -> (N, C*8*128): contiguous, free; no pad, no copy.
        feats_y = pooled_y.reshape(n, self.feat_pad)
        feats_h = pooled_h.reshape(n, self.feat_pad)

        loss = pl.pallas_call(
            _embed_loss_kernel,
            out_shape=jax.ShapeDtypeStruct((1, 1), jnp.float32),
            grid=(1,),
            in_specs=[
                pl.BlockSpec((n, self.feat_pad), lambda i: (0, 0)),
                pl.BlockSpec((n, self.feat_pad), lambda i: (0, 0)),
                pl.BlockSpec(self.w_exp.shape, lambda i: (0, 0)),
                pl.BlockSpec(self.b.shape, lambda i: (0, 0)),
            ],
            out_specs=pl.BlockSpec((1, 1), lambda i: (0, 0)),
        )(feats_y, feats_h, self.w_exp, self.b)

        sim_improvement = jnp.float32(0.0)   # original accumulates 0 / count
        return loss[0, 0], sim_improvement


# ----------------------------- reference (jnp) ------------------------------ #

def _reference(idl, y_hat, y):
    """Unfolded pure-jnp pipeline (pool-256 -> crop -> pool-112 -> pool-7 -> linear)."""
    def embed(xx):
        nb, _, h, w = xx.shape
        ph = adaptive_pool_matrix(256, h) if h != 256 else np.eye(256, dtype=np.float32)
        pw = adaptive_pool_matrix(256, w) if w != 256 else np.eye(256, dtype=np.float32)
        x256 = jnp.einsum('oh,nchw,pw->ncop', jnp.asarray(ph), xx, jnp.asarray(pw))
        face = x256[:, :, 35:223, 32:220]
        f112 = jnp.einsum('oh,nchw,pw->ncop', jnp.asarray(idl.p112), face,
                          jnp.asarray(idl.p112))
        f7 = jnp.einsum('oh,nchw,pw->ncop', jnp.asarray(idl.p7), f112,
                        jnp.asarray(idl.p7))
        return f7.reshape(nb, -1) @ idl.w + idl.b

    e_y, e_h = embed(y), embed(y_hat)
    dots = jnp.sum(e_y * e_h, axis=-1)
    norms = jnp.linalg.norm(e_y, axis=-1) * jnp.linalg.norm(e_h, axis=-1)
    sim = jnp.abs(dots / norms)
    return jnp.mean(1.0 - sim)


if __name__ == "__main__":
    key = jax.random.PRNGKey(0)
    k1, k2, k3 = jax.random.split(key, 3)
    x = jax.random.normal(k1, (2, 3, 64, 64), jnp.float32)
    x_hat = jax.random.normal(k2, (2, 3, 64, 64), jnp.float32)

    id_loss = IDLossT(k3, channels=3)
    loss, sim_imp = id_loss(x_hat, x)
    jax.block_until_ready(loss)

    ref = _reference(id_loss, x_hat, x)
    assert jnp.isfinite(loss), "kernel produced non-finite loss"
    assert jnp.allclose(loss, ref, rtol=2e-2, atol=2e-2), (loss, ref)
    print("KERNEL_OK")
</pallas_src>

<mosaic_0001>
module attributes {stable_mosaic.version = 11 : i64} {
  func.func @_pool_planes_kernel(%arg0: i32, %arg1: memref<6x64x64xf32, #tpu.memory_space<vmem>>, %arg2: memref<6x64x64xf32, #tpu.memory_space<vmem>>, %arg3: memref<8x64xf32, #tpu.memory_space<vmem>>, %arg4: memref<64x128xf32, #tpu.memory_space<vmem>>, %arg5: memref<6x8x128xf32, #tpu.memory_space<vmem>>, %arg6: memref<6x8x128xf32, #tpu.memory_space<vmem>>) attributes {dimension_semantics = [#tpu.dimension_semantics<parallel>], iteration_bounds = array<i64: 1>, scalar_prefetch = 0 : i64, scratch_operands = 0 : i64, tpu.core_type = #tpu.core_type<tc>, window_params = [{transform_indices = @transform_0, window_bounds = array<i64: 6, 64, 64>}, {transform_indices = @transform_1, window_bounds = array<i64: 6, 64, 64>}, {pipeline_mode = #tpu.pipeline_mode<synchronous>, transform_indices = @transform_2, window_bounds = array<i64: 8, 64>}, {pipeline_mode = #tpu.pipeline_mode<synchronous>, transform_indices = @transform_3, window_bounds = array<i64: 64, 128>}, {transform_indices = @transform_4, window_bounds = array<i64: 6, 8, 128>}, {transform_indices = @transform_5, window_bounds = array<i64: 6, 8, 128>}]} {
    %c0 = arith.constant 0 : index
    %c0_0 = arith.constant 0 : index
    %0 = vector.load %arg3[%c0, %c0_0] : memref<8x64xf32, #tpu.memory_space<vmem>>, vector<8x64xf32>
    %1 = vector.shape_cast %0 : vector<8x64xf32> to vector<1x8x64xf32>
    %2 = vector.broadcast %1 : vector<1x8x64xf32> to vector<6x8x64xf32>
    %c0_1 = arith.constant 0 : index
    %c0_2 = arith.constant 0 : index
    %c0_3 = arith.constant 0 : index
    %3 = vector.load %arg1[%c0_1, %c0_2, %c0_3] : memref<6x64x64xf32, #tpu.memory_space<vmem>>, vector<6x64x64xf32>
    %4 = vector.shape_cast %3 : vector<6x64x64xf32> to vector<384x64xf32>
    %c0_4 = arith.constant 0 : index
    %c0_5 = arith.constant 0 : index
    %5 = vector.load %arg4[%c0_4, %c0_5] : memref<64x128xf32, #tpu.memory_space<vmem>>, vector<64x128xf32>
    %cst = arith.constant dense<0.000000e+00> : vector<384x128xf32>
    %6 = tpu.matmul %4, %5, %cst {dimension_numbers = #tpu.dot_dimension_numbers<[1], [0], [0], [1], [0, 0, 1, 1], [], []>} : vector<384x64xf32>, vector<64x128xf32>, vector<384x128xf32> -> vector<384x128xf32>
    %7 = vector.shape_cast %6 : vector<384x128xf32> to vector<6x64x128xf32>
    "tpu.trace_start"() <{level = 10 : i32, message = "poh,phk->pok"}> : () -> ()
    %cst_6 = arith.constant dense<0.000000e+00> : vector<6x8x128xf32>
    %8 = tpu.matmul %2, %7, %cst_6 {dimension_numbers = #tpu.dot_dimension_numbers<[2], [1], [1], [2], [0, 0, 0, 1, 1, 2], [0], [0]>} : vector<6x8x64xf32>, vector<6x64x128xf32>, vector<6x8x128xf32> -> vector<6x8x128xf32>
    "tpu.trace_stop"() : () -> ()
    %c0_7 = arith.constant 0 : index
    %c0_8 = arith.constant 0 : index
    %c0_9 = arith.constant 0 : index
    %9 = vector.load %arg5[%c0_7, %c0_8, %c0_9] : memref<6x8x128xf32, #tpu.memory_space<vmem>>, vector<6x8x128xf32>
    tpu.vector_store %arg5[%c0_7, %c0_8, %c0_9], %8 {strides = array<i32>} : memref<6x8x128xf32, #tpu.memory_space<vmem>>, vector<6x8x128xf32>,
    %c0_10 = arith.constant 0 : index
    %c0_11 = arith.constant 0 : index
    %c0_12 = arith.constant 0 : index
    %10 = vector.load %arg2[%c0_10, %c0_11, %c0_12] : memref<6x64x64xf32, #tpu.memory_space<vmem>>, vector<6x64x64xf32>
    %11 = vector.shape_cast %10 : vector<6x64x64xf32> to vector<384x64xf32>
    %c0_13 = arith.constant 0 : index
    %c0_14 = arith.constant 0 : index
    %12 = vector.load %arg4[%c0_13, %c0_14] : memref<64x128xf32, #tpu.memory_space<vmem>>, vector<64x128xf32>
    %cst_15 = arith.constant dense<0.000000e+00> : vector<384x128xf32>
    %13 = tpu.matmul %11, %12, %cst_15 {dimension_numbers = #tpu.dot_dimension_numbers<[1], [0], [0], [1], [0, 0, 1, 1], [], []>} : vector<384x64xf32>, vector<64x128xf32>, vector<384x128xf32> -> vector<384x128xf32>
    %14 = vector.shape_cast %13 : vector<384x128xf32> to vector<6x64x128xf32>
    "tpu.trace_start"() <{level = 10 : i32, message = "poh,phk->pok"}> : () -> ()
    %cst_16 = arith.constant dense<0.000000e+00> : vector<6x8x128xf32>
    %15 = tpu.matmul %2, %14, %cst_16 {dimension_numbers = #tpu.dot_dimension_numbers<[2], [1], [1], [2], [0, 0, 0, 1, 1, 2], [0], [0]>} : vector<6x8x64xf32>, vector<6x64x128xf32>, vector<6x8x128xf32> -> vector<6x8x128xf32>
    "tpu.trace_stop"() : () -> ()
    %c0_17 = arith.constant 0 : index
    %c0_18 = arith.constant 0 : index
    %c0_19 = arith.constant 0 : index
    %16 = vector.load %arg6[%c0_17, %c0_18, %c0_19] : memref<6x8x128xf32, #tpu.memory_space<vmem>>, vector<6x8x128xf32>
    tpu.vector_store %arg6[%c0_17, %c0_18, %c0_19], %15 {strides = array<i32>} : memref<6x8x128xf32, #tpu.memory_space<vmem>>, vector<6x8x128xf32>,
    return
  }
  func.func @transform_0(%arg0: i32) -> (i32, i32, i32) {
    %c0_i32 = arith.constant 0 : i32
    %c0_i32_0 = arith.constant 0 : i32
    %c0_i32_1 = arith.constant 0 : i32
    return %arg0, %c0_i32, %c0_i32_0 : i32, i32, i32
  }
  func.func @transform_1(%arg0: i32) -> (i32, i32, i32) {
    %c0_i32 = arith.constant 0 : i32
    %c0_i32_0 = arith.constant 0 : i32
    %c0_i32_1 = arith.constant 0 : i32
    return %arg0, %c0_i32, %c0_i32_0 : i32, i32, i32
  }
  func.func @transform_2(%arg0: i32) -> (i32, i32) {
    %c0_i32 = arith.constant 0 : i32
    %c0_i32_0 = arith.constant 0 : i32
    %c0_i32_1 = arith.constant 0 : i32
    return %c0_i32, %c0_i32_0 : i32, i32
  }
  func.func @transform_3(%arg0: i32) -> (i32, i32) {
    %c0_i32 = arith.constant 0 : i32
    %c0_i32_0 = arith.constant 0 : i32
    %c0_i32_1 = arith.constant 0 : i32
    return %c0_i32, %c0_i32_0 : i32, i32
  }
  func.func @transform_4(%arg0: i32) -> (i32, i32, i32) {
    %c0_i32 = arith.constant 0 : i32
    %c0_i32_0 = arith.constant 0 : i32
    %c0_i32_1 = arith.constant 0 : i32
    return %arg0, %c0_i32, %c0_i32_0 : i32, i32, i32
  }
  func.func @transform_5(%arg0: i32) -> (i32, i32, i32) {
    %c0_i32 = arith.constant 0 : i32
    %c0_i32_0 = arith.constant 0 : i32
    %c0_i32_1 = arith.constant 0 : i32
    return %arg0, %c0_i32, %c0_i32_0 : i32, i32, i32
  }
}

</mosaic_0001>

<bundles_post_ra>
// kernel: tpu_custom_call.1
= control target key start
LH: loop header
LB: loop body
LE: loop exit
PB: predicated region body
PF: predicated region fallthrough
CT: control target
= control target key end

     0   :  { %11 = vsyncpa [#allocation3], 0  ;;  %s3163_s0 = inlined_call_operand.hbm [shape: f32[6,64,64], index: 0, kind: input, shape index: {}]   ;;  %s3164_s1 = inlined_call_operand.hbm [shape: f32[6,64,64], index: 1, kind: input, shape index: {}]   ;;  %s3165_s2 = inlined_call_operand.hbm [shape: f32[8,64], index: 2, kind: input, shape index: {}]   ;;  %s3166_s3 = inlined_call_operand.hbm [shape: f32[64,128], index: 3, kind: input, shape index: {}]   ;;  %s3167_s4 = inlined_call_operand.hbm [shape: f32[6,8,128], index: 4, kind: output, shape index: {0}]   ;;  %s3168_s5 = inlined_call_operand.hbm [shape: f32[6,8,128], index: 5, kind: output, shape index: {1}]  }
   0x1   :  { %12 = vsyncpa [#allocation6], 0 }
   0x2   :  { %13 = vsyncpa [#allocation9], 0 }
   0x3   :  { %14 = vsyncpa [#allocation4], 0 }
   0x4   :  { %15 = vsyncpa [#allocation12], 0  ;;  %s2848_s18 = smov [#allocation5]   ;;  %s2849_s20 = smov [#allocation2]  }
   0x5   :  { %s33_s19 = sshll.u32 %s2848_s18, 4  ;;  %s21_s21 = sshll.u32 %s2849_s20, 4  ;;  %s34_s19 = int_to_ptr.vmem [resolvable:$true] %s33_s19  ;;  %s22_s21 = int_to_ptr.vmem [resolvable:$true] %s21_s21 }
   0x6   :  { %s2726_s22 = scalar_lea.vmem %s34_s19, 6144  ;;  %p2731_p1 = scmp.lt.s32.totalorder %s34_s19, %s34_s19 }
   0x7   :  { %p2727_p0 = scmp.ne.s32.totalorder %s34_s19, %s2726_s22  ;;  %p2732_p2 = scmp.lt.s32.totalorder %s2726_s22, %s2726_s22 }
   0x9   :  { %p2733_p3 = por %p2732_p2, %p2731_p1 }
   0xb   :  { %p2734_p4 = pnand %p2733_p3, %p2727_p0 }
   0xd   :  { %2737 = shalt.err (!%p2734_p4)
}
   0xe   :  { %s2850_s23 = smov 128   ;;  %s2851_s24 = smov 8  }
   0xf   :  { %39 = dma.hbm_to_vmem [thread:$0]  %s3164_s1, 6144, %s34_s19, [#allocation6], %s2850_s23, %s2850_s23, %s2851_s24  }
  0x10   :  { %s2746_s27 = scalar_lea.vmem %s22_s21, 6144  ;;  %p2751_p6 = scmp.lt.s32.totalorder %s22_s21, %s22_s21 }
  0x11   :  { %p2747_p5 = scmp.ne.s32.totalorder %s22_s21, %s2746_s27  ;;  %p2752_p7 = scmp.lt.s32.totalorder %s2746_s27, %s2746_s27 }
  0x13   :  { %p2753_p8 = por %p2752_p7, %p2751_p6 }
  0x15   :  { %p2754_p9 = pnand %p2753_p8, %p2747_p5 }
  0x17   :  { %2757 = shalt.err (!%p2754_p9)
}
  0x18   :  { %27 = dma.hbm_to_vmem [thread:$0]  %s3163_s0, 6144, %s22_s21, [#allocation3], %s2850_s23, %s2850_s23, %s2851_s24  }
  0x19   :  { %s2852_s30 = smov [#allocation7]   ;;  %s2853_s7 = smov [#allocation8]  }
  0x1a   :  { %s46_s6 = sshll.u32 %s2852_s30, 4  ;;  %s55_s8 = sshll.u32 %s2853_s7, 4  ;;  %s47_s6 = int_to_ptr.vmem [resolvable:$true] %s46_s6  ;;  %s56_s8 = int_to_ptr.vmem [resolvable:$true] %s55_s8 }
  0x1b   :  { %s2766_s1 = scalar_lea.vmem %s47_s6, 128  ;;  %p2771_p11 = scmp.lt.s32.totalorder %s47_s6, %s47_s6 }
  0x1c   :  { %p2767_p10 = scmp.ne.s32.totalorder %s47_s6, %s2766_s1  ;;  %p2772_p12 = scmp.lt.s32.totalorder %s2766_s1, %s2766_s1 }
  0x1e   :  { %p2773_p13 = por %p2772_p12, %p2771_p11 }
  0x20   :  { %p2774_p0 = pnand %p2773_p13, %p2767_p10 }
  0x22   :  { %2777 = shalt.err (!%p2774_p0)
}
  0x23   :  { %49 = dma.hbm_to_vmem [thread:$0]  %s3165_s2, 128, %s47_s6, [#allocation6]  }
  0x24   :  { %s2786_s11 = scalar_lea.vmem %s56_s8, 1024  ;;  %p2791_p2 = scmp.lt.s32.totalorder %s56_s8, %s56_s8 }
  0x25   :  { %p2787_p1 = scmp.ne.s32.totalorder %s56_s8, %s2786_s11  ;;  %p2792_p3 = scmp.lt.s32.totalorder %s2786_s11, %s2786_s11 }
  0x27   :  { %p2793_p4 = por %p2792_p3, %p2791_p2 }
  0x29   :  { %p2794_p5 = pnand %p2793_p4, %p2787_p1 }
  0x2b   :  { %2797 = shalt.err (!%p2794_p5)
}
  0x2c   :  { %61 = dma.hbm_to_vmem [thread:$0]  %s3166_s3, 1024, %s56_s8, [#allocation9], %s2850_s23, %s2850_s23, %s2851_s24  }
  0x2d   :  { %2838 = dma.done.wait [#allocation3], 6144  }
  0x2e   :  { %2839 = vsyncadd [#allocation3], 4294961152 }
  0x2f   :  { %2840 = dma.done.wait [#allocation6], 6272  }
  0x30   :  { %2841 = vsyncadd [#allocation6], 4294961024 }
  0x31   :  { %2842 = dma.done.wait [#allocation9], 1024  }
  0x32   :  { %2843 = vsyncadd [#allocation9], 4294966272  ;;  %v130_v0 = vld [vmem:[#allocation8 + $0x38] sm:$0xff]  ;;  %v129_v1 = vld [vmem:[#allocation8 + $0x30] sm:$0xff]  ;;  %vm131_vm0 = vcmask 523264   ;;  %v2854_v49 = vmov 0.0  }
  0x33   :  { %2304 = vmatprep.subr.mxu0 %v130_v0  ;;  %v128_v2 = vld [vmem:[#allocation8 + $0x28] sm:$0xff]  ;;  %v75_v3 = vld [vmem:[#allocation2] sm:$0xff]  ;;  %v127_v4 = vld [vmem:[#allocation8 + $0x20] sm:$0xff]  ;;  %2392 = vmatprep.subr.mxu1 %v2854_v49  ;;  %vm2855_vm1 = vmmov 0   ;;  %s2856_s2 = smov [#allocation10]  }
  0x34   :  { %2305 = vmatpush3.msra.mxu0 %v130_v0  ;;  %2320 = vmatprep.mubr.msk.f32.mxu0 %vm131_vm0, %v75_v3  ;;  %v126_v5 = vld [vmem:[#allocation8 + $0x18] sm:$0xff]  ;;  %v125_v6 = vld [vmem:[#allocation8 + $0x10] sm:$0xff]  ;;  %v124_v7 = vld [vmem:[#allocation8 + $0x8] sm:$0xff]  ;;  %s1946_s3 = sshll.u32 %s2856_s2, 4  ;;  %s1947_s3 = int_to_ptr.vmem [resolvable:$true] %s1946_s3 }
  0x35   :  { %2306 = vmatprep.subr.mxu0 %v129_v1  ;;  %v123_v8 = vld [vmem:[#allocation8] sm:$0xff]  ;;  %v77_v10 = vld [vmem:[#allocation2 + $0x10] sm:$0xff]  ;;  %v78_v11 = vld [vmem:[#allocation2 + $0x18] sm:$0xff]  ;;  %2408 = vmatprep.mubr.msk.f32.mxu1 %vm2855_vm1, %v2854_v49  ;;  %s2798_s13 = scalar_lea.vmem %s1947_s3, 768  ;;  %p2803_p7 = scmp.lt.s32.totalorder %s1947_s3, %s1947_s3 }
  0x36   :  { %2307 = vmatpush3.msra.mxu0 %v129_v1  ;;  %v76_v9 = vld [vmem:[#allocation2 + $0x8] sm:$0xff]  ;;  %v79_v12 = vld [vmem:[#allocation2 + $0x20] sm:$0xff]  ;;  %v81_v14 = vld [vmem:[#allocation2 + $0x30] sm:$0xff]  ;;  %p2799_p6 = scmp.ne.s32.totalorder %s1947_s3, %s2798_s13  ;;  %p2804_p8 = scmp.lt.s32.totalorder %s2798_s13, %s2798_s13 }
  0x37   :  { %2308 = vmatprep.subr.mxu0 %v128_v2  ;;  %v80_v13 = vld [vmem:[#allocation2 + $0x28] sm:$0xff]  ;;  %v82_v15 = vld [vmem:[#allocation2 + $0x38] sm:$0xff]  ;;  %v83_v16 = vld [vmem:[#allocation2 + $0x40] sm:$0xff] }
  0x38   :  { %2309 = vmatpush3.msra.mxu0 %v128_v2  ;;  %v84_v17 = vld [vmem:[#allocation2 + $0x48] sm:$0xff]  ;;  %v85_v18 = vld [vmem:[#allocation2 + $0x50] sm:$0xff]  ;;  %v86_v19 = vld [vmem:[#allocation2 + $0x58] sm:$0xff]  ;;  %p2805_p9 = por %p2804_p8, %p2803_p7 }
  0x39   :  { %2310 = vmatprep.subr.mxu0 %v127_v4  ;;  %v87_v20 = vld [vmem:[#allocation2 + $0x60] sm:$0xff]  ;;  %v88_v21 = vld [vmem:[#allocation2 + $0x68] sm:$0xff]  ;;  %v89_v22 = vld [vmem:[#allocation2 + $0x70] sm:$0xff] }
  0x3a   :  { %2311 = vmatpush3.msra.mxu0 %v127_v4  ;;  %v90_v23 = vld [vmem:[#allocation2 + $0x78] sm:$0xff]  ;;  %v91_v24 = vld [vmem:[#allocation2 + $0x80] sm:$0xff]  ;;  %v92_v25 = vld [vmem:[#allocation2 + $0x88] sm:$0xff]  ;;  %p2806_p10 = pnand %p2805_p9, %p2799_p6 }
  0x3b   :  { %2312 = vmatprep.subr.mxu0 %v126_v5  ;;  %v93_v26 = vld [vmem:[#allocation2 + $0x90] sm:$0xff]  ;;  %v94_v27 = vld [vmem:[#allocation2 + $0x98] sm:$0xff]  ;;  %v95_v28 = vld [vmem:[#allocation2 + $0xa0] sm:$0xff] }
  0x3c   :  { %2313 = vmatpush3.msra.mxu0 %v126_v5  ;;  %v96_v29 = vld [vmem:[#allocation2 + $0xa8] sm:$0xff]  ;;  %v97_v30 = vld [vmem:[#allocation2 + $0xb0] sm:$0xff]  ;;  %v98_v31 = vld [vmem:[#allocation2 + $0xb8] sm:$0xff] }
  0x3d   :  { %2314 = vmatprep.subr.mxu0 %v125_v6  ;;  %v99_v32 = vld [vmem:[#allocation2 + $0xc0] sm:$0xff]  ;;  %v100_v33 = vld [vmem:[#allocation2 + $0xc8] sm:$0xff]  ;;  %v101_v34 = vld [vmem:[#allocation2 + $0xd0] sm:$0xff] }
  0x3e   :  { %2315 = vmatpush3.msra.mxu0 %v125_v6  ;;  %v102_v35 = vld [vmem:[#allocation2 + $0xd8] sm:$0xff]  ;;  %v103_v36 = vld [vmem:[#allocation2 + $0xe0] sm:$0xff]  ;;  %v104_v37 = vld [vmem:[#allocation2 + $0xe8] sm:$0xff] }
  0x3f   :  { %2316 = vmatprep.subr.mxu0 %v124_v7  ;;  %v105_v38 = vld [vmem:[#allocation2 + $0xf0] sm:$0xff]  ;;  %v106_v39 = vld [vmem:[#allocation2 + $0xf8] sm:$0xff]  ;;  %v107_v40 = vld [vmem:[#allocation2 + $0x100] sm:$0xff] }
  0x40   :  { %2317 = vmatpush3.msra.mxu0 %v124_v7  ;;  %v108_v41 = vld [vmem:[#allocation2 + $0x108] sm:$0xff]  ;;  %v109_v42 = vld [vmem:[#allocation2 + $0x110] sm:$0xff]  ;;  %v110_v43 = vld [vmem:[#allocation2 + $0x118] sm:$0xff] }
  0x41   :  { %2318 = vmatprep.subr.mxu0 %v123_v8  ;;  %v111_v44 = vld [vmem:[#allocation2 + $0x120] sm:$0xff]  ;;  %v112_v45 = vld [vmem:[#allocation2 + $0x128] sm:$0xff]  ;;  %v113_v46 = vld [vmem:[#allocation2 + $0x130] sm:$0xff] }
  0x42   :  { %2319 = vmatpush3.msra.mxu0 %v123_v8  ;;  %v114_v47 = vld [vmem:[#allocation2 + $0x138] sm:$0xff]  ;;  %v115_v48 = vld [vmem:[#allocation2 + $0x140] sm:$0xff]  ;;  %v116_v50 = vld [vmem:[#allocation2 + $0x148] sm:$0xff] }
  0x43   :  { %2321 = vmatmul.mubr.msk.f32.vlgmr.msra.gmra.mxu0 %vm131_vm0, %v76_v9  ;;  %2506 = vmatprep.subr.mxu0 %v130_v0  ;;  %v117_v51 = vld [vmem:[#allocation2 + $0x150] sm:$0xff]  ;;  %v118_v52 = vld [vmem:[#allocation2 + $0x158] sm:$0xff]  ;;  %v119_v53 = vld [vmem:[#allocation2 + $0x160] sm:$0xff] }
  0x44   :  { %2507 = vmatpush3.msra.mxu0 %v130_v0  ;;  %2323 = vmatprep.mubr.msk.f32.mxu0 %vm131_vm0, %v77_v10  ;;  %v120_v54 = vld [vmem:[#allocation2 + $0x168] sm:$0xff]  ;;  %v121_v55 = vld [vmem:[#allocation2 + $0x170] sm:$0xff]  ;;  %v122_v56 = vld [vmem:[#allocation2 + $0x178] sm:$0xff] }
  0x45   :  { %2508 = vmatprep.subr.mxu0 %v129_v1  ;;  %v1010_v57 = vld [vmem:[#allocation5] sm:$0xff]  ;;  %v1011_v58 = vld [vmem:[#allocation5 + $0x8] sm:$0xff]  ;;  %v1012_v59 = vld [vmem:[#allocation5 + $0x10] sm:$0xff] }
  0x46   :  { %2509 = vmatpush3.msra.mxu0 %v129_v1  ;;  %v1013_v60 = vld [vmem:[#allocation5 + $0x18] sm:$0xff]  ;;  %v1014_v61 = vld [vmem:[#allocation5 + $0x20] sm:$0xff]  ;;  %v1015_v62 = vld [vmem:[#allocation5 + $0x28] sm:$0xff] }
  0x47   :  { %2324 = vmatmul.mubr.msk.f32.gmra.mxu0 %vm131_vm0, %v78_v11  ;;  %2510 = vmatprep.subr.mxu0 %v128_v2  ;;  %v1016_v63 = vld [vmem:[#allocation5 + $0x30] sm:$0xff]  ;;  %v1017_v0 = vld [vmem:[#allocation5 + $0x38] sm:$0xff]  ;;  %v1018_v1 = vld [vmem:[#allocation5 + $0x40] sm:$0xff] }
  0x48   :  { %2326 = vmatprep.mubr.msk.f32.mxu0 %vm131_vm0, %v79_v12  ;;  %2511 = vmatpush3.msra.mxu0 %v128_v2  ;;  %v1019_v2 = vld [vmem:[#allocation5 + $0x48] sm:$0xff]  ;;  %v1020_v3 = vld [vmem:[#allocation5 + $0x50] sm:$0xff]  ;;  %v1026_v9 = vld [vmem:[#allocation5 + $0x80] sm:$0xff] }
  0x49   :  { %2512 = vmatprep.subr.mxu0 %v127_v4  ;;  %v1027_v10 = vld [vmem:[#allocation5 + $0x88] sm:$0xff]  ;;  %v1028_v11 = vld [vmem:[#allocation5 + $0x90] sm:$0xff]  ;;  %v1029_v12 = vld [vmem:[#allocation5 + $0x98] sm:$0xff] }
  0x4a   :  { %2513 = vmatpush3.msra.mxu0 %v127_v4  ;;  %v1021_v4 = vld [vmem:[#allocation5 + $0x58] sm:$0xff] }
  0x4b   :  { %2327 = vmatmul.mubr.msk.f32.gmra.mxu0 %vm131_vm0, %v80_v13  ;;  %2514 = vmatprep.subr.mxu0 %v126_v5  ;;  %v1030_v13 = vld [vmem:[#allocation5 + $0xa0] sm:$0xff] }
  0x4c   :  { %2329 = vmatprep.mubr.msk.f32.mxu0 %vm131_vm0, %v81_v14  ;;  %2515 = vmatpush3.msra.mxu0 %v126_v5  ;;  %v1022_v5 = vld [vmem:[#allocation5 + $0x60] sm:$0xff]  ;;  %v1031_v14 = vld [vmem:[#allocation5 + $0xa8] sm:$0xff] }
  0x4d   :  { %2516 = vmatprep.subr.mxu0 %v125_v6 }
  0x4e   :  { %2517 = vmatpush3.msra.mxu0 %v125_v6  ;;  %v1023_v6 = vld [vmem:[#allocation5 + $0x68] sm:$0xff] }
  0x4f   :  { %2330 = vmatmul.mubr.msk.f32.gmra.mxu0 %vm131_vm0, %v82_v15  ;;  %2518 = vmatprep.subr.mxu0 %v124_v7  ;;  %v1032_v15 = vld [vmem:[#allocation5 + $0xb0] sm:$0xff] }
  0x50   :  { %2332 = vmatprep.mubr.msk.f32.mxu0 %vm131_vm0, %v83_v16  ;;  %2519 = vmatpush3.msra.mxu0 %v124_v7  ;;  %v1024_v7 = vld [vmem:[#allocation5 + $0x70] sm:$0xff]  ;;  %v1033_v16 = vld [vmem:[#allocation5 + $0xb8] sm:$0xff] }
  0x51   :  { %2520 = vmatprep.subr.mxu0 %v123_v8 }
  0x52   :  { %2521 = vmatpush3.msra.mxu0 %v123_v8  ;;  %v1025_v8 = vld [vmem:[#allocation5 + $0x78] sm:$0xff] }
  0x53   :  { %2333 = vmatmul.mubr.msk.f32.gmra.mxu0 %vm131_vm0, %v84_v17  ;;  %v1034_v17 = vld [vmem:[#allocation5 + $0xc0] sm:$0xff] }
  0x54   :  { %2335 = vmatprep.mubr.msk.f32.mxu0 %vm131_vm0, %v85_v18  ;;  %v1035_v18 = vld [vmem:[#allocation5 + $0xc8] sm:$0xff] }
  0x57   :  { %2336 = vmatmul.mubr.msk.f32.gmra.mxu0 %vm131_vm0, %v86_v19  ;;  %v1036_v19 = vld [vmem:[#allocation5 + $0xd0] sm:$0xff] }
  0x58   :  { %2338 = vmatprep.mubr.msk.f32.mxu0 %vm131_vm0, %v87_v20  ;;  %v1037_v20 = vld [vmem:[#allocation5 + $0xd8] sm:$0xff] }
  0x5b   :  { %2339 = vmatmul.mubr.msk.f32.gmra.mxu0 %vm131_vm0, %v88_v21  ;;  %v1038_v21 = vld [vmem:[#allocation5 + $0xe0] sm:$0xff] }
  0x5c   :  { %2341 = vmatprep.mubr.msk.f32.mxu0 %vm131_vm0, %v89_v22  ;;  %v1039_v22 = vld [vmem:[#allocation5 + $0xe8] sm:$0xff] }
  0x5f   :  { %2342 = vmatmul.mubr.msk.f32.gmra.mxu0 %vm131_vm0, %v90_v23  ;;  %v1040_v23 = vld [vmem:[#allocation5 + $0xf0] sm:$0xff] }
  0x60   :  { %2344 = vmatprep.mubr.msk.f32.mxu0 %vm131_vm0, %v91_v24  ;;  %v1041_v24 = vld [vmem:[#allocation5 + $0xf8] sm:$0xff] }
  0x63   :  { %2345 = vmatmul.mubr.msk.f32.gmra.mxu0 %vm131_vm0, %v92_v25  ;;  %v1042_v25 = vld [vmem:[#allocation5 + $0x100] sm:$0xff] }
  0x64   :  { %2347 = vmatprep.mubr.msk.f32.mxu0 %vm131_vm0, %v93_v26  ;;  %v1043_v26 = vld [vmem:[#allocation5 + $0x108] sm:$0xff] }
  0x67   :  { %2348 = vmatmul.mubr.msk.f32.gmra.mxu0 %vm131_vm0, %v94_v27  ;;  %v1044_v27 = vld [vmem:[#allocation5 + $0x110] sm:$0xff] }
  0x68   :  { %2350 = vmatprep.mubr.msk.f32.mxu0 %vm131_vm0, %v95_v28  ;;  %v1045_v28 = vld [vmem:[#allocation5 + $0x118] sm:$0xff] }
  0x6b   :  { %2351 = vmatmul.mubr.msk.f32.gmra.mxu0 %vm131_vm0, %v96_v29  ;;  %v1046_v29 = vld [vmem:[#allocation5 + $0x120] sm:$0xff] }
  0x6c   :  { %2353 = vmatprep.mubr.msk.f32.mxu0 %vm131_vm0, %v97_v30  ;;  %v1047_v30 = vld [vmem:[#allocation5 + $0x128] sm:$0xff] }
  0x6f   :  { %2354 = vmatmul.mubr.msk.f32.gmra.mxu0 %vm131_vm0, %v98_v31  ;;  %v1048_v31 = vld [vmem:[#allocation5 + $0x130] sm:$0xff] }
  0x70   :  { %2356 = vmatprep.mubr.msk.f32.mxu0 %vm131_vm0, %v99_v32  ;;  %v1049_v32 = vld [vmem:[#allocation5 + $0x138] sm:$0xff] }
  0x73   :  { %2357 = vmatmul.mubr.msk.f32.gmra.mxu0 %vm131_vm0, %v100_v33  ;;  %v1050_v33 = vld [vmem:[#allocation5 + $0x140] sm:$0xff] }
  0x74   :  { %2359 = vmatprep.mubr.msk.f32.mxu0 %vm131_vm0, %v101_v34  ;;  %v1051_v34 = vld [vmem:[#allocation5 + $0x148] sm:$0xff] }
  0x77   :  { %2360 = vmatmul.mubr.msk.f32.gmra.mxu0 %vm131_vm0, %v102_v35  ;;  %v1052_v35 = vld [vmem:[#allocation5 + $0x150] sm:$0xff] }
  0x78   :  { %2362 = vmatprep.mubr.msk.f32.mxu0 %vm131_vm0, %v103_v36  ;;  %v1053_v36 = vld [vmem:[#allocation5 + $0x158] sm:$0xff] }
  0x7b   :  { %2363 = vmatmul.mubr.msk.f32.gmra.mxu0 %vm131_vm0, %v104_v37  ;;  %v1054_v37 = vld [vmem:[#allocation5 + $0x160] sm:$0xff] }
  0x7c   :  { %2365 = vmatprep.mubr.msk.f32.mxu0 %vm131_vm0, %v105_v38  ;;  %v1055_v38 = vld [vmem:[#allocation5 + $0x168] sm:$0xff] }
  0x7f   :  { %2366 = vmatmul.mubr.msk.f32.gmra.mxu0 %vm131_vm0, %v106_v39  ;;  %v1056_v39 = vld [vmem:[#allocation5 + $0x170] sm:$0xff] }
  0x80   :  { %2368 = vmatprep.mubr.msk.f32.mxu0 %vm131_vm0, %v107_v40  ;;  %v1057_v40 = vld [vmem:[#allocation5 + $0x178] sm:$0xff] }
  0x83   :  { %2369 = vmatmul.mubr.msk.f32.gmra.mxu0 %vm131_vm0, %v108_v41 }
  0x84   :  { %2371 = vmatprep.mubr.msk.f32.mxu0 %vm131_vm0, %v109_v42 }
  0x87   :  { %2372 = vmatmul.mubr.msk.f32.gmra.mxu0 %vm131_vm0, %v110_v43 }
  0x88   :  { %2374 = vmatprep.mubr.msk.f32.mxu0 %vm131_vm0, %v111_v44 }
  0x8b   :  { %2375 = vmatmul.mubr.msk.f32.gmra.mxu0 %vm131_vm0, %v112_v45 }
  0x8c   :  { %2377 = vmatprep.mubr.msk.f32.mxu0 %vm131_vm0, %v113_v46 }
  0x8f   :  { %2378 = vmatmul.mubr.msk.f32.gmra.mxu0 %vm131_vm0, %v114_v47 }
  0x90   :  { %2380 = vmatprep.mubr.msk.f32.mxu0 %vm131_vm0, %v115_v48 }
  0x93   :  { %2381 = vmatmul.mubr.msk.f32.gmra.mxu0 %vm131_vm0, %v116_v50 }
  0x94   :  { %2383 = vmatprep.mubr.msk.f32.mxu0 %vm131_vm0, %v117_v51 }
  0x97   :  { %2384 = vmatmul.mubr.msk.f32.gmra.mxu0 %vm131_vm0, %v118_v52 }
  0x98   :  { %2386 = vmatprep.mubr.msk.f32.mxu0 %vm131_vm0, %v119_v53 }
  0x9b   :  { %2387 = vmatmul.mubr.msk.f32.gmra.mxu0 %vm131_vm0, %v120_v54 }
  0x9c   :  { %2389 = vmatprep.mubr.msk.f32.mxu0 %vm131_vm0, %v121_v55  ;;  %v3014_v55 = vld [vmem:[#allocation7] sm:$0xff] }
  0x9f   :  { %2390 = vmatmul.mubr.msk.f32.gmra.mxu0 %vm131_vm0, %v122_v56 }
  0xa0   :  { %2522 = vmatprep.mubr.msk.f32.mxu0 %vm131_vm0, %v1010_v57 }
  0xa3   :  { %2523 = vmatmul.mubr.msk.f32.vlgmr.msra.gmra.mxu0 %vm131_vm0, %v1011_v58 }
  0xa4   :  { %2525 = vmatprep.mubr.msk.f32.mxu0 %vm131_vm0, %v1012_v59 }
  0xa7   :  { %2526 = vmatmul.mubr.msk.f32.gmra.mxu0 %vm131_vm0, %v1013_v60 }
  0xa8   :  { %2528 = vmatprep.mubr.msk.f32.mxu0 %vm131_vm0, %v1014_v61 }
  0xab   :  { %2529 = vmatmul.mubr.msk.f32.gmra.mxu0 %vm131_vm0, %v1015_v62 }
  0xac   :  { %2531 = vmatprep.mubr.msk.f32.mxu0 %vm131_vm0, %v1016_v63 }
  0xaf   :  { %2532 = vmatmul.mubr.msk.f32.gmra.mxu0 %vm131_vm0, %v1017_v0 }
  0xb0   :  { %2534 = vmatprep.mubr.msk.f32.mxu0 %vm131_vm0, %v1018_v1 }
  0xb3   :  { %2535 = vmatmul.mubr.msk.f32.gmra.mxu0 %vm131_vm0, %v1019_v2 }
  0xb4   :  { %2537 = vmatprep.mubr.msk.f32.mxu0 %vm131_vm0, %v1020_v3 }
  0xb7   :  { %2538 = vmatmul.mubr.msk.f32.gmra.mxu0 %vm131_vm0, %v1021_v4 }
  0xb8   :  { %2540 = vmatprep.mubr.msk.f32.mxu0 %vm131_vm0, %v1022_v5 }
  0xbb   :  { %2541 = vmatmul.mubr.msk.f32.gmra.mxu0 %vm131_vm0, %v1023_v6 }
  0xbc   :  { %2543 = vmatprep.mubr.msk.f32.mxu0 %vm131_vm0, %v1024_v7 }
  0xbf   :  { %2544 = vmatmul.mubr.msk.f32.gmra.mxu0 %vm131_vm0, %v1025_v8 }
  0xc0   :  { %2546 = vmatprep.mubr.msk.f32.mxu0 %vm131_vm0, %v1026_v9 }
  0xc3   :  { %2547 = vmatmul.mubr.msk.f32.gmra.mxu0 %vm131_vm0, %v1027_v10 }
  0xc4   :  { %2549 = vmatprep.mubr.msk.f32.mxu0 %vm131_vm0, %v1028_v11 }
  0xc7   :  { %2550 = vmatmul.mubr.msk.f32.gmra.mxu0 %vm131_vm0, %v1029_v12 }
  0xc8   :  { %2552 = vmatprep.mubr.msk.f32.mxu0 %vm131_vm0, %v1030_v13 }
  0xcb   :  { %2553 = vmatmul.mubr.msk.f32.gmra.mxu0 %vm131_vm0, %v1031_v14 }
  0xcc   :  { %2555 = vmatprep.mubr.msk.f32.mxu0 %vm131_vm0, %v1032_v15 }
  0xcf   :  { %2556 = vmatmul.mubr.msk.f32.gmra.mxu0 %vm131_vm0, %v1033_v16 }
  0xd0   :  { %2558 = vmatprep.mubr.msk.f32.mxu0 %vm131_vm0, %v1034_v17 }
  0xd3   :  { %2559 = vmatmul.mubr.msk.f32.gmra.mxu0 %vm131_vm0, %v1035_v18 }
  0xd4   :  { %2561 = vmatprep.mubr.msk.f32.mxu0 %vm131_vm0, %v1036_v19 }
  0xd7   :  { %2562 = vmatmul.mubr.msk.f32.gmra.mxu0 %vm131_vm0, %v1037_v20 }
  0xd8   :  { %2564 = vmatprep.mubr.msk.f32.mxu0 %vm131_vm0, %v1038_v21 }
  0xdb   :  { %2565 = vmatmul.mubr.msk.f32.gmra.mxu0 %vm131_vm0, %v1039_v22 }
  0xdc   :  { %2567 = vmatprep.mubr.msk.f32.mxu0 %vm131_vm0, %v1040_v23 }
  0xdf   :  { %2568 = vmatmul.mubr.msk.f32.gmra.mxu0 %vm131_vm0, %v1041_v24 }
  0xe0   :  { %2570 = vmatprep.mubr.msk.f32.mxu0 %vm131_vm0, %v1042_v25 }
  0xe3   :  { %2571 = vmatmul.mubr.msk.f32.gmra.mxu0 %vm131_vm0, %v1043_v26 }
  0xe4   :  { %2573 = vmatprep.mubr.msk.f32.mxu0 %vm131_vm0, %v1044_v27 }
  0xe7   :  { %2574 = vmatmul.mubr.msk.f32.gmra.mxu0 %vm131_vm0, %v1045_v28 }
  0xe8   :  { %2576 = vmatprep.mubr.msk.f32.mxu0 %vm131_vm0, %v1046_v29 }
  0xeb   :  { %2577 = vmatmul.mubr.msk.f32.gmra.mxu0 %vm131_vm0, %v1047_v30 }
  0xec   :  { %2579 = vmatprep.mubr.msk.f32.mxu0 %vm131_vm0, %v1048_v31 }
  0xef   :  { %2580 = vmatmul.mubr.msk.f32.gmra.mxu0 %vm131_vm0, %v1049_v32 }
  0xf0   :  { %2582 = vmatprep.mubr.msk.f32.mxu0 %vm131_vm0, %v1050_v33 }
  0xf3   :  { %2583 = vmatmul.mubr.msk.f32.gmra.mxu0 %vm131_vm0, %v1051_v34 }
  0xf4   :  { %2585 = vmatprep.mubr.msk.f32.mxu0 %vm131_vm0, %v1052_v35 }
  0xf7   :  { %2586 = vmatmul.mubr.msk.f32.gmra.mxu0 %vm131_vm0, %v1053_v36 }
  0xf8   :  { %2588 = vmatprep.mubr.msk.f32.mxu0 %vm131_vm0, %v1054_v37 }
  0xfb   :  { %2589 = vmatmul.mubr.msk.f32.gmra.mxu0 %vm131_vm0, %v1055_v38 }
  0xfc   :  { %2591 = vmatprep.mubr.msk.f32.mxu0 %vm131_vm0, %v1056_v39 }
  0xff   :  { %2592 = vmatmul.mubr.msk.f32.gmra.mxu0 %vm131_vm0, %v1057_v40 }
 0x103   :  { %v2322_v41 = vpop.f32.mrf.mxu0 }
 0x105   :  { %v342_v42 = vpop.f32.mrf.mxu0 }
 0x107   :  { %v2325_v43 = vpop.f32.mrf.mxu0 }
 0x109   :  { %v352_v44 = vpop.f32.mrf.mxu0 }
 0x10b   :  { %v2328_v45 = vpop.f32.mrf.mxu0 }
 0x10d   :  { %v362_v46 = vpop.f32.mrf.mxu0 }
 0x10f   :  { %v2331_v47 = vpop.f32.mrf.mxu0 }
 0x110   :  { %2393 = vmatpush3.msra.mxu1 %v2331_v47 }
 0x111   :  { %v372_v48 = vpop.f32.mrf.mxu0  ;;  %2394 = vmatprep.subr.mxu1 %v2854_v49 }
 0x112   :  { %2395 = vmatpush3.msra.mxu1 %v372_v48 }
 0x113   :  { %v2334_v50 = vpop.f32.mrf.mxu0  ;;  %2396 = vmatprep.subr.mxu1 %v2854_v49 }
 0x114   :  { %2397 = vmatpush3.msra.mxu1 %v2328_v45 }
 0x115   :  { %v382_v51 = vpop.f32.mrf.mxu0  ;;  %2398 = vmatprep.subr.mxu1 %v2854_v49 }
 0x116   :  { %2399 = vmatpush3.msra.mxu1 %v362_v46 }
 0x117   :  { %v2337_v52 = vpop.f32.mrf.mxu0  ;;  %2400 = vmatprep.subr.mxu1 %v2854_v49 }
 0x118   :  { %2401 = vmatpush3.msra.mxu1 %v2325_v43 }
 0x119   :  { %v392_v53 = vpop.f32.mrf.mxu0  ;;  %2402 = vmatprep.subr.mxu1 %v2854_v49 }
 0x11a   :  { %2403 = vmatpush3.msra.mxu1 %v352_v44 }
 0x11b   :  { %v2340_v54 = vpop.f32.mrf.mxu0  ;;  %2404 = vmatprep.subr.mxu1 %v2854_v49 }
 0x11c   :  { %2405 = vmatpush3.msra.mxu1 %v2322_v41 }
 0x11d   :  { %v402_v56 = vpop.f32.mrf.mxu0  ;;  %2406 = vmatprep.subr.mxu1 %v2854_v49 }
 0x11e   :  { %2407 = vmatpush3.msra.mxu1 %v342_v42 }
 0x11f   :  { %v2343_v57 = vpop.f32.mrf.mxu0  ;;  %2409 = vmatmul.mubr.msk.f32.vlgmr.msra.gmra.mxu1 %vm131_vm0, %v3014_v55  ;;  %2411 = vmatprep.subr.mxu1 %v2854_v49 }
 0x120   :  { %2412 = vmatpush3.msra.mxu1 %v2343_v57  ;;  %2427 = vmatprep.mubr.msk.f32.mxu1 %vm2855_vm1, %v2854_v49 }
 0x121   :  { %v412_v58 = vpop.f32.mrf.mxu0  ;;  %2413 = vmatprep.subr.mxu1 %v2854_v49 }
 0x122   :  { %2414 = vmatpush3.msra.mxu1 %v412_v58 }
 0x123   :  { %v2346_v59 = vpop.f32.mrf.mxu0  ;;  %2415 = vmatprep.subr.mxu1 %v2854_v49 }
 0x124   :  { %2416 = vmatpush3.msra.mxu1 %v2340_v54 }
 0x125   :  { %v422_v60 = vpop.f32.mrf.mxu0  ;;  %2417 = vmatprep.subr.mxu1 %v2854_v49 }
 0x126   :  { %2418 = vmatpush3.msra.mxu1 %v402_v56 }
 0x127   :  { %v2349_v61 = vpop.f32.mrf.mxu0  ;;  %2419 = vmatprep.subr.mxu1 %v2854_v49 }
 0x128   :  { %2420 = vmatpush3.msra.mxu1 %v2337_v52 }
 0x129   :  { %v432_v62 = vpop.f32.mrf.mxu0  ;;  %2421 = vmatprep.subr.mxu1 %v2854_v49 }
 0x12a   :  { %2422 = vmatpush3.msra.mxu1 %v392_v53 }
 0x12b   :  { %v2352_v63 = vpop.f32.mrf.mxu0  ;;  %2423 = vmatprep.subr.mxu1 %v2854_v49 }
 0x12c   :  { %2424 = vmatpush3.msra.mxu1 %v2334_v50 }
 0x12d   :  { %v442_v0 = vpop.f32.mrf.mxu0  ;;  %2425 = vmatprep.subr.mxu1 %v2854_v49 }
 0x12e   :  { %2426 = vmatpush3.msra.mxu1 %v382_v51 }
 0x12f   :  { %v2355_v1 = vpop.f32.mrf.mxu0  ;;  %2428 = vmatmul.mubr.msk.f32.vlgmr.msra.gmra.mxu1 %vm131_vm0, %v3014_v55  ;;  %2430 = vmatprep.subr.mxu1 %v2854_v49 }
 0x130   :  { %2431 = vmatpush3.msra.mxu1 %v2355_v1  ;;  %2446 = vmatprep.mubr.msk.f32.mxu1 %vm2855_vm1, %v2854_v49 }
 0x131   :  { %v452_v2 = vpop.f32.mrf.mxu0  ;;  %2432 = vmatprep.subr.mxu1 %v2854_v49 }
 0x132   :  { %2433 = vmatpush3.msra.mxu1 %v452_v2 }
 0x133   :  { %v2358_v3 = vpop.f32.mrf.mxu0  ;;  %2434 = vmatprep.subr.mxu1 %v2854_v49 }
 0x134   :  { %2435 = vmatpush3.msra.mxu1 %v2352_v63 }
 0x135   :  { %v462_v4 = vpop.f32.mrf.mxu0  ;;  %2436 = vmatprep.subr.mxu1 %v2854_v49 }
 0x136   :  { %2437 = vmatpush3.msra.mxu1 %v442_v0 }
 0x137   :  { %v2361_v5 = vpop.f32.mrf.mxu0  ;;  %2438 = vmatprep.subr.mxu1 %v2854_v49 }
 0x138   :  { %2439 = vmatpush3.msra.mxu1 %v2349_v61 }
 0x139   :  { %v472_v6 = vpop.f32.mrf.mxu0  ;;  %2440 = vmatprep.subr.mxu1 %v2854_v49 }
 0x13a   :  { %2441 = vmatpush3.msra.mxu1 %v432_v62 }
 0x13b   :  { %v2364_v7 = vpop.f32.mrf.mxu0  ;;  %2442 = vmatprep.subr.mxu1 %v2854_v49 }
 0x13c   :  { %2443 = vmatpush3.msra.mxu1 %v2346_v59 }
 0x13d   :  { %v482_v8 = vpop.f32.mrf.mxu0  ;;  %2444 = vmatprep.subr.mxu1 %v2854_v49 }
 0x13e   :  { %2445 = vmatpush3.msra.mxu1 %v422_v60 }
 0x13f   :  { %v2367_v9 = vpop.f32.mrf.mxu0  ;;  %2447 = vmatmul.mubr.msk.f32.vlgmr.msra.gmra.mxu1 %vm131_vm0, %v3014_v55  ;;  %2449 = vmatprep.subr.mxu1 %v2854_v49 }
 0x140   :  { %2450 = vmatpush3.msra.mxu1 %v2367_v9  ;;  %2465 = vmatprep.mubr.msk.f32.mxu1 %vm2855_vm1, %v2854_v49 }
 0x141   :  { %v492_v10 = vpop.f32.mrf.mxu0  ;;  %2451 = vmatprep.subr.mxu1 %v2854_v49 }
 0x142   :  { %2452 = vmatpush3.msra.mxu1 %v492_v10 }
 0x143   :  { %v2370_v11 = vpop.f32.mrf.mxu0  ;;  %2453 = vmatprep.subr.mxu1 %v2854_v49 }
 0x144   :  { %2454 = vmatpush3.msra.mxu1 %v2364_v7 }
 0x145   :  { %v502_v12 = vpop.f32.mrf.mxu0  ;;  %2455 = vmatprep.subr.mxu1 %v2854_v49 }
 0x146   :  { %2456 = vmatpush3.msra.mxu1 %v482_v8 }
 0x147   :  { %v2373_v13 = vpop.f32.mrf.mxu0  ;;  %2457 = vmatprep.subr.mxu1 %v2854_v49 }
 0x148   :  { %2458 = vmatpush3.msra.mxu1 %v2361_v5 }
 0x149   :  { %v512_v14 = vpop.f32.mrf.mxu0  ;;  %2459 = vmatprep.subr.mxu1 %v2854_v49 }
 0x14a   :  { %2460 = vmatpush3.msra.mxu1 %v472_v6 }
 0x14b   :  { %v2376_v15 = vpop.f32.mrf.mxu0  ;;  %2461 = vmatprep.subr.mxu1 %v2854_v49 }
 0x14c   :  { %2462 = vmatpush3.msra.mxu1 %v2358_v3 }
 0x14d   :  { %v522_v16 = vpop.f32.mrf.mxu0  ;;  %2463 = vmatprep.subr.mxu1 %v2854_v49 }
 0x14e   :  { %2464 = vmatpush3.msra.mxu1 %v462_v4 }
 0x14f   :  { %v2379_v17 = vpop.f32.mrf.mxu0  ;;  %2466 = vmatmul.mubr.msk.f32.vlgmr.msra.gmra.mxu1 %vm131_vm0, %v3014_v55  ;;  %2468 = vmatprep.subr.mxu1 %v2854_v49 }
 0x150   :  { %2469 = vmatpush3.msra.mxu1 %v2379_v17  ;;  %2484 = vmatprep.mubr.msk.f32.mxu1 %vm2855_vm1, %v2854_v49 }
 0x151   :  { %v532_v18 = vpop.f32.mrf.mxu0  ;;  %2470 = vmatprep.subr.mxu1 %v2854_v49 }
 0x152   :  { %2471 = vmatpush3.msra.mxu1 %v532_v18 }
 0x153   :  { %v2382_v19 = vpop.f32.mrf.mxu0  ;;  %2472 = vmatprep.subr.mxu1 %v2854_v49 }
 0x154   :  { %2473 = vmatpush3.msra.mxu1 %v2376_v15 }
 0x155   :  { %v542_v20 = vpop.f32.mrf.mxu0  ;;  %2474 = vmatprep.subr.mxu1 %v2854_v49 }
 0x156   :  { %2475 = vmatpush3.msra.mxu1 %v522_v16 }
 0x157   :  { %v2385_v21 = vpop.f32.mrf.mxu0  ;;  %2476 = vmatprep.subr.mxu1 %v2854_v49 }
 0x158   :  { %2477 = vmatpush3.msra.mxu1 %v2373_v13 }
 0x159   :  { %v552_v22 = vpop.f32.mrf.mxu0  ;;  %2478 = vmatprep.subr.mxu1 %v2854_v49 }
 0x15a   :  { %2479 = vmatpush3.msra.mxu1 %v512_v14 }
 0x15b   :  { %v2388_v23 = vpop.f32.mrf.mxu0  ;;  %2480 = vmatprep.subr.mxu1 %v2854_v49 }
 0x15c   :  { %2481 = vmatpush3.msra.mxu1 %v2370_v11 }
 0x15d   :  { %v562_v24 = vpop.f32.mrf.mxu0  ;;  %2482 = vmatprep.subr.mxu1 %v2854_v49 }
 0x15e   :  { %2483 = vmatpush3.msra.mxu1 %v502_v12 }
 0x15f   :  { %v2391_v25 = vpop.f32.mrf.mxu0  ;;  %2485 = vmatmul.mubr.msk.f32.vlgmr.msra.gmra.mxu1 %vm131_vm0, %v3014_v55  ;;  %2487 = vmatprep.subr.mxu1 %v2854_v49 }
 0x160   :  { %2488 = vmatpush3.msra.mxu1 %v2391_v25  ;;  %2503 = vmatprep.mubr.msk.f32.mxu1 %vm2855_vm1, %v2854_v49 }
 0x161   :  { %v572_v26 = vpop.f32.mrf.mxu0  ;;  %2489 = vmatprep.subr.mxu1 %v2854_v49 }
 0x162   :  { %2490 = vmatpush3.msra.mxu1 %v572_v26 }
 0x163   :  { %2491 = vmatprep.subr.mxu1 %v2854_v49  ;;  %v2524_v27 = vpop.f32.mrf.mxu0 }
 0x164   :  { %2492 = vmatpush3.msra.mxu1 %v2388_v23 }
 0x165   :  { %2493 = vmatprep.subr.mxu1 %v2854_v49  ;;  %v1276_v28 = vpop.f32.mrf.mxu0 }
 0x166   :  { %2494 = vmatpush3.msra.mxu1 %v562_v24 }
 0x167   :  { %2495 = vmatprep.subr.mxu1 %v2854_v49  ;;  %v2527_v29 = vpop.f32.mrf.mxu0 }
 0x168   :  { %2496 = vmatpush3.msra.mxu1 %v2385_v21 }
 0x169   :  { %2497 = vmatprep.subr.mxu1 %v2854_v49  ;;  %v1286_v30 = vpop.f32.mrf.mxu0 }
 0x16a   :  { %2498 = vmatpush3.msra.mxu1 %v552_v22 }
 0x16b   :  { %2499 = vmatprep.subr.mxu1 %v2854_v49  ;;  %v2530_v31 = vpop.f32.mrf.mxu0 }
 0x16c   :  { %2500 = vmatpush3.msra.mxu1 %v2382_v19 }
 0x16d   :  { %2501 = vmatprep.subr.mxu1 %v2854_v49  ;;  %v1296_v32 = vpop.f32.mrf.mxu0 }
 0x16e   :  { %2502 = vmatpush3.msra.mxu1 %v542_v20 }
 0x16f   :  { %2504 = vmatmul.mubr.msk.f32.vlgmr.msra.gmra.mxu1 %vm131_vm0, %v3014_v55  ;;  %v2533_v33 = vpop.f32.mrf.mxu0  ;;  %2594 = vmatprep.subr.mxu1 %v2854_v49 }
 0x170   :  { %2595 = vmatpush3.msra.mxu1 %v2533_v33  ;;  %2610 = vmatprep.mubr.msk.f32.mxu1 %vm2855_vm1, %v2854_v49 }
 0x171   :  { %v1306_v34 = vpop.f32.mrf.mxu0  ;;  %2596 = vmatprep.subr.mxu1 %v2854_v49 }
 0x172   :  { %2597 = vmatpush3.msra.mxu1 %v1306_v34 }
 0x173   :  { %v2536_v35 = vpop.f32.mrf.mxu0  ;;  %2598 = vmatprep.subr.mxu1 %v2854_v49 }
 0x174   :  { %2599 = vmatpush3.msra.mxu1 %v2530_v31 }
 0x175   :  { %v1316_v36 = vpop.f32.mrf.mxu0  ;;  %2600 = vmatprep.subr.mxu1 %v2854_v49 }
 0x176   :  { %2601 = vmatpush3.msra.mxu1 %v1296_v32 }
 0x177   :  { %v2539_v37 = vpop.f32.mrf.mxu0  ;;  %2602 = vmatprep.subr.mxu1 %v2854_v49 }
 0x178   :  { %2603 = vmatpush3.msra.mxu1 %v2527_v29 }
 0x179   :  { %v1326_v38 = vpop.f32.mrf.mxu0  ;;  %2604 = vmatprep.subr.mxu1 %v2854_v49 }
 0x17a   :  { %2605 = vmatpush3.msra.mxu1 %v1286_v30 }
 0x17b   :  { %v2542_v39 = vpop.f32.mrf.mxu0  ;;  %2606 = vmatprep.subr.mxu1 %v2854_v49 }
 0x17c   :  { %2607 = vmatpush3.msra.mxu1 %v2524_v27 }
 0x17d   :  { %v1336_v40 = vpop.f32.mrf.mxu0  ;;  %2608 = vmatprep.subr.mxu1 %v2854_v49 }
 0x17e   :  { %2609 = vmatpush3.msra.mxu1 %v1276_v28 }
 0x17f   :  { %v2545_v41 = vpop.f32.mrf.mxu0  ;;  %2611 = vmatmul.mubr.msk.f32.vlgmr.msra.gmra.mxu1 %vm131_vm0, %v3014_v55  ;;  %2613 = vmatprep.subr.mxu1 %v2854_v49 }
 0x180   :  { %2614 = vmatpush3.msra.mxu1 %v2545_v41  ;;  %2629 = vmatprep.mubr.msk.f32.mxu1 %vm2855_vm1, %v2854_v49 }
 0x181   :  { %v1346_v42 = vpop.f32.mrf.mxu0  ;;  %2615 = vmatprep.subr.mxu1 %v2854_v49 }
 0x182   :  { %2616 = vmatpush3.msra.mxu1 %v1346_v42 }
 0x183   :  { %v2548_v43 = vpop.f32.mrf.mxu0  ;;  %2617 = vmatprep.subr.mxu1 %v2854_v49 }
 0x184   :  { %2618 = vmatpush3.msra.mxu1 %v2542_v39 }
 0x185   :  { %v1356_v44 = vpop.f32.mrf.mxu0  ;;  %2619 = vmatprep.subr.mxu1 %v2854_v49 }
 0x186   :  { %2620 = vmatpush3.msra.mxu1 %v1336_v40 }
 0x187   :  { %v2551_v45 = vpop.f32.mrf.mxu0  ;;  %2621 = vmatprep.subr.mxu1 %v2854_v49 }
 0x188   :  { %2622 = vmatpush3.msra.mxu1 %v2539_v37 }
 0x189   :  { %v1366_v46 = vpop.f32.mrf.mxu0  ;;  %2623 = vmatprep.subr.mxu1 %v2854_v49 }
 0x18a   :  { %2624 = vmatpush3.msra.mxu1 %v1326_v38 }
 0x18b   :  { %v2554_v47 = vpop.f32.mrf.mxu0  ;;  %2625 = vmatprep.subr.mxu1 %v2854_v49 }
 0x18c   :  { %2626 = vmatpush3.msra.mxu1 %v2536_v35 }
 0x18d   :  { %v1376_v48 = vpop.f32.mrf.mxu0  ;;  %2627 = vmatprep.subr.mxu1 %v2854_v49 }
 0x18e   :  { %2628 = vmatpush3.msra.mxu1 %v1316_v36 }
 0x18f   :  { %v2557_v50 = vpop.f32.mrf.mxu0  ;;  %2630 = vmatmul.mubr.msk.f32.vlgmr.msra.gmra.mxu1 %vm131_vm0, %v3014_v55  ;;  %2632 = vmatprep.subr.mxu1 %v2854_v49 }
 0x190   :  { %2633 = vmatpush3.msra.mxu1 %v2557_v50  ;;  %2648 = vmatprep.mubr.msk.f32.mxu1 %vm2855_vm1, %v2854_v49 }
 0x191   :  { %v1386_v51 = vpop.f32.mrf.mxu0  ;;  %2634 = vmatprep.subr.mxu1 %v2854_v49 }
 0x192   :  { %2635 = vmatpush3.msra.mxu1 %v1386_v51 }
 0x193   :  { %v2560_v52 = vpop.f32.mrf.mxu0  ;;  %2636 = vmatprep.subr.mxu1 %v2854_v49 }
 0x194   :  { %2637 = vmatpush3.msra.mxu1 %v2554_v47 }
 0x195   :  { %v1396_v53 = vpop.f32.mrf.mxu0  ;;  %2638 = vmatprep.subr.mxu1 %v2854_v49 }
 0x196   :  { %2639 = vmatpush3.msra.mxu1 %v1376_v48 }
 0x197   :  { %v2563_v54 = vpop.f32.mrf.mxu0  ;;  %2640 = vmatprep.subr.mxu1 %v2854_v49 }
 0x198   :  { %2641 = vmatpush3.msra.mxu1 %v2551_v45 }
 0x199   :  { %v1406_v56 = vpop.f32.mrf.mxu0  ;;  %2642 = vmatprep.subr.mxu1 %v2854_v49 }
 0x19a   :  { %2643 = vmatpush3.msra.mxu1 %v1366_v46 }
 0x19b   :  { %v2566_v57 = vpop.f32.mrf.mxu0  ;;  %2644 = vmatprep.subr.mxu1 %v2854_v49 }
 0x19c   :  { %2645 = vmatpush3.msra.mxu1 %v2548_v43 }
 0x19d   :  { %v1416_v58 = vpop.f32.mrf.mxu0  ;;  %2646 = vmatprep.subr.mxu1 %v2854_v49 }
 0x19e   :  { %2647 = vmatpush3.msra.mxu1 %v1356_v44 }
 0x19f   :  { %v2569_v59 = vpop.f32.mrf.mxu0  ;;  %2649 = vmatmul.mubr.msk.f32.vlgmr.msra.gmra.mxu1 %vm131_vm0, %v3014_v55  ;;  %2651 = vmatprep.subr.mxu1 %v2854_v49 }
 0x1a0   :  { %2652 = vmatpush3.msra.mxu1 %v2569_v59  ;;  %2667 = vmatprep.mubr.msk.f32.mxu1 %vm2855_vm1, %v2854_v49 }
 0x1a1   :  { %v1426_v60 = vpop.f32.mrf.mxu0  ;;  %2653 = vmatprep.subr.mxu1 %v2854_v49 }
 0x1a2   :  { %2654 = vmatpush3.msra.mxu1 %v1426_v60 }
 0x1a3   :  { %v2572_v61 = vpop.f32.mrf.mxu0  ;;  %2655 = vmatprep.subr.mxu1 %v2854_v49 }
 0x1a4   :  { %2656 = vmatpush3.msra.mxu1 %v2566_v57 }
 0x1a5   :  { %v1436_v62 = vpop.f32.mrf.mxu0  ;;  %2657 = vmatprep.subr.mxu1 %v2854_v49 }
 0x1a6   :  { %2658 = vmatpush3.msra.mxu1 %v1416_v58 }
 0x1a7   :  { %v2575_v63 = vpop.f32.mrf.mxu0  ;;  %2659 = vmatprep.subr.mxu1 %v2854_v49 }
 0x1a8   :  { %2660 = vmatpush3.msra.mxu1 %v2563_v54 }
 0x1a9   :  { %v1446_v0 = vpop.f32.mrf.mxu0  ;;  %2661 = vmatprep.subr.mxu1 %v2854_v49 }
 0x1aa   :  { %2662 = vmatpush3.msra.mxu1 %v1406_v56 }
 0x1ab   :  { %v2578_v1 = vpop.f32.mrf.mxu0  ;;  %2663 = vmatprep.subr.mxu1 %v2854_v49 }
 0x1ac   :  { %2664 = vmatpush3.msra.mxu1 %v2560_v52 }
 0x1ad   :  { %v1456_v2 = vpop.f32.mrf.mxu0  ;;  %2665 = vmatprep.subr.mxu1 %v2854_v49 }
 0x1ae   :  { %2666 = vmatpush3.msra.mxu1 %v1396_v53 }
 0x1af   :  { %v2581_v3 = vpop.f32.mrf.mxu0  ;;  %2668 = vmatmul.mubr.msk.f32.vlgmr.msra.gmra.mxu1 %vm131_vm0, %v3014_v55  ;;  %2670 = vmatprep.subr.mxu1 %v2854_v49 }
 0x1b0   :  { %2671 = vmatpush3.msra.mxu1 %v2581_v3  ;;  %2686 = vmatprep.mubr.msk.f32.mxu1 %vm2855_vm1, %v2854_v49 }
 0x1b1   :  { %v1466_v4 = vpop.f32.mrf.mxu0  ;;  %2672 = vmatprep.subr.mxu1 %v2854_v49 }
 0x1b2   :  { %2673 = vmatpush3.msra.mxu1 %v1466_v4 }
 0x1b3   :  { %v2584_v5 = vpop.f32.mrf.mxu0  ;;  %2674 = vmatprep.subr.mxu1 %v2854_v49 }
 0x1b4   :  { %2675 = vmatpush3.msra.mxu1 %v2578_v1 }
 0x1b5   :  { %v1476_v6 = vpop.f32.mrf.mxu0  ;;  %2676 = vmatprep.subr.mxu1 %v2854_v49 }
 0x1b6   :  { %2677 = vmatpush3.msra.mxu1 %v1456_v2 }
 0x1b7   :  { %v2587_v7 = vpop.f32.mrf.mxu0  ;;  %2678 = vmatprep.subr.mxu1 %v2854_v49 }
 0x1b8   :  { %2679 = vmatpush3.msra.mxu1 %v2575_v63 }
 0x1b9   :  { %v1486_v8 = vpop.f32.mrf.mxu0  ;;  %2680 = vmatprep.subr.mxu1 %v2854_v49 }
 0x1ba   :  { %2681 = vmatpush3.msra.mxu1 %v1446_v0 }
 0x1bb   :  { %v2590_v9 = vpop.f32.mrf.mxu0  ;;  %2682 = vmatprep.subr.mxu1 %v2854_v49 }
 0x1bc   :  { %2683 = vmatpush3.msra.mxu1 %v2572_v61 }
 0x1bd   :  { %v1496_v10 = vpop.f32.mrf.mxu0  ;;  %2684 = vmatprep.subr.mxu1 %v2854_v49 }
 0x1be   :  { %2685 = vmatpush3.msra.mxu1 %v1436_v62 }
 0x1bf   :  { %v2593_v11 = vpop.f32.mrf.mxu0  ;;  %2687 = vmatmul.mubr.msk.f32.vlgmr.msra.gmra.mxu1 %vm131_vm0, %v3014_v55  ;;  %2689 = vmatprep.subr.mxu1 %v2854_v49 }
 0x1c0   :  { %2690 = vmatpush3.msra.mxu1 %v2593_v11  ;;  %2705 = vmatprep.mubr.msk.f32.mxu1 %vm2855_vm1, %v2854_v49 }
 0x1c1   :  { %v1506_v12 = vpop.f32.mrf.mxu0  ;;  %2691 = vmatprep.subr.mxu1 %v2854_v49 }
 0x1c2   :  { %2692 = vmatpush3.msra.mxu1 %v1506_v12 }
 0x1c3   :  { %2693 = vmatprep.subr.mxu1 %v2854_v49 }
 0x1c4   :  { %2694 = vmatpush3.msra.mxu1 %v2590_v9 }
 0x1c5   :  { %2695 = vmatprep.subr.mxu1 %v2854_v49 }
 0x1c6   :  { %2696 = vmatpush3.msra.mxu1 %v1496_v10 }
 0x1c7   :  { %2697 = vmatprep.subr.mxu1 %v2854_v49 }
 0x1c8   :  { %2698 = vmatpush3.msra.mxu1 %v2587_v7 }
 0x1c9   :  { %2699 = vmatprep.subr.mxu1 %v2854_v49 }
 0x1ca   :  { %2700 = vmatpush3.msra.mxu1 %v1486_v8 }
 0x1cb   :  { %2701 = vmatprep.subr.mxu1 %v2854_v49 }
 0x1cc   :  { %2702 = vmatpush3.msra.mxu1 %v2584_v5 }
 0x1cd   :  { %2703 = vmatprep.subr.mxu1 %v2854_v49 }
 0x1ce   :  { %2704 = vmatpush3.msra.mxu1 %v1476_v6 }
 0x1cf   :  { %2706 = vmatmul.mubr.msk.f32.vlgmr.msra.gmra.mxu1 %vm131_vm0, %v3014_v55 }
 0x1df   :  { %v650_v13 = vpop.f32.mrf.mxu1 }
 0x1e0   :  { %1004 = vst [vmem:[#allocation10] sm:$0xff] %v650_v13 }
 0x1e1   :  { %v2410_v14 = vpop.f32.mrf.mxu1 }
 0x1ef   :  { %v720_v15 = vpop.f32.mrf.mxu1 }
 0x1f0   :  { %1005 = vst [vmem:[#allocation10 + $0x8] sm:$0xff] %v720_v15 }
 0x1f1   :  { %v2429_v16 = vpop.f32.mrf.mxu1 }
 0x1ff   :  { %v790_v17 = vpop.f32.mrf.mxu1 }
 0x200   :  { %1006 = vst [vmem:[#allocation10 + $0x10] sm:$0xff] %v790_v17 }
 0x201   :  { %v2448_v18 = vpop.f32.mrf.mxu1 }
 0x20f   :  { %v860_v19 = vpop.f32.mrf.mxu1 }
 0x210   :  { %1007 = vst [vmem:[#allocation10 + $0x18] sm:$0xff] %v860_v19 }
 0x211   :  { %v2467_v20 = vpop.f32.mrf.mxu1 }
 0x21f   :  { %v930_v21 = vpop.f32.mrf.mxu1 }
 0x220   :  { %1008 = vst [vmem:[#allocation10 + $0x20] sm:$0xff] %v930_v21 }
 0x221   :  { %v2486_v22 = vpop.f32.mrf.mxu1 }
 0x22f   :  { %v1000_v49 = vpop.f32.mrf.mxu1 }
 0x230   :  { %1009 = vst [vmem:[#allocation10 + $0x28] sm:$0xff] %v1000_v49 }
 0x231   :  { %v2505_v55 = vpop.f32.mrf.mxu1 }
 0x232   :  { %2809 = shalt.err (!%p2806_p10)
}
 0x233   :  { %1952 = dma.vmem_to_hbm [thread:$0]  %s1947_s3, 768, %s3167_s4, [#allocation4], %s2850_s23, %s2850_s23, %s2851_s24  }
 0x234   :  { %s2857_s16 = smov [#allocation11]  }
 0x235   :  { %s1958_s17 = sshll.u32 %s2857_s16, 4  ;;  %s1959_s17 = int_to_ptr.vmem [resolvable:$true] %s1958_s17 }
 0x236   :  { %s2818_s4 = scalar_lea.vmem %s1959_s17, 768  ;;  %p2823_p12 = scmp.lt.s32.totalorder %s1959_s17, %s1959_s17 }
 0x237   :  { %p2819_p11 = scmp.ne.s32.totalorder %s1959_s17, %s2818_s4  ;;  %p2824_p13 = scmp.lt.s32.totalorder %s2818_s4, %s2818_s4 }
 0x239   :  { %p2825_p0 = por %p2824_p13, %p2823_p12 }
 0x23b   :  { %p2826_p1 = pnand %p2825_p0, %p2819_p11 }
 0x23f   :  { %v1581_v23 = vpop.f32.mrf.mxu1 }
 0x240   :  { %1935 = vst [vmem:[#allocation11] sm:$0xff] %v1581_v23 }
 0x241   :  { %v2612_v24 = vpop.f32.mrf.mxu1 }
 0x24f   :  { %v1651_v25 = vpop.f32.mrf.mxu1 }
 0x250   :  { %1936 = vst [vmem:[#allocation11 + $0x8] sm:$0xff] %v1651_v25 }
 0x251   :  { %v2631_v26 = vpop.f32.mrf.mxu1 }
 0x25f   :  { %v1721_v27 = vpop.f32.mrf.mxu1 }
 0x260   :  { %1937 = vst [vmem:[#allocation11 + $0x10] sm:$0xff] %v1721_v27 }
 0x261   :  { %v2650_v28 = vpop.f32.mrf.mxu1 }
 0x26f   :  { %v1791_v29 = vpop.f32.mrf.mxu1 }
 0x270   :  { %1938 = vst [vmem:[#allocation11 + $0x18] sm:$0xff] %v1791_v29 }
 0x271   :  { %v2669_v30 = vpop.f32.mrf.mxu1 }
 0x27f   :  { %v1861_v31 = vpop.f32.mrf.mxu1 }
 0x280   :  { %1939 = vst [vmem:[#allocation11 + $0x20] sm:$0xff] %v1861_v31 }
 0x281   :  { %v2688_v32 = vpop.f32.mrf.mxu1 }
 0x28f   :  { %v1931_v33 = vpop.f32.mrf.mxu1 }
 0x290   :  { %1940 = vst [vmem:[#allocation11 + $0x28] sm:$0xff] %v1931_v33 }
 0x291   :  { %v2707_v34 = vpop.f32.mrf.mxu1 }
 0x292   :  { %2829 = shalt.err (!%p2826_p1)
}
 0x293   :  { %1964 = dma.vmem_to_hbm [thread:$0]  %s1959_s17, 768, %s3168_s5, [#allocation12], %s2850_s23, %s2850_s23, %s2851_s24  }
 0x294   :  { %2844 = dma.done.wait [#allocation4], 768  }
 0x295   :  { %2845 = vsyncadd [#allocation4], 4294966528 }
 0x296   :  { %2846 = dma.done.wait [#allocation12], 768  }
 0x297   :  { %2847 = vsyncadd [#allocation12], 4294966528 }
 0x298   :  { %1971 = vsyncpa [#allocation3], 1 }
 0x299   :  { %1972 = vsyncpa [#allocation6], 1 }
 0x29a   :  { %1973 = vsyncpa [#allocation9], 1 }
 0x29b   :  { %1974 = vsyncpa [#allocation4], 1 }
 0x29c   :  { %1975 = vsyncpa [#allocation12], 1 }

</bundles_post_ra>
